<compile_context>
chip_gen: v6e
topology: v6e:2x2x1
jax: 0.10.0
libtpu: 0.0.40
codegen_flags: <defaults>
</compile_context>

<pallas_src>
import math
from functools import partial

import jax
import jax.numpy as jnp
from jax import lax
from jax.experimental import pallas as pl
from jax.experimental.pallas import tpu as pltpu

LN_EPS = 1e-5
_SQRT_2_OVER_PI = math.sqrt(2.0 / math.pi)
_INV_SQRT_2 = 1.0 / math.sqrt(2.0)


def _ffn_kernel(x_ref, ln_w_ref, ln_b_ref, w1_ref, b1_ref, w2_ref, b2_ref,
                o_ref, xn_ref, acc_ref, *, approx_gelu, mxu_dtype):
    """One (row_tile, hidden_tile) step of the fused FFN.

    grid = (token_tiles, hidden_tiles); the hidden axis is a reduction carried
    in acc_ref.  LayerNorm runs only on the first hidden step and its output
    (already cast to the MXU dtype) is cached in xn_ref.
    """
    k = pl.program_id(1)

    @pl.when(k == 0)
    def _init():
        x = x_ref[...].astype(jnp.float32)
        n = x.shape[-1]
        # Single-pass LayerNorm statistics: sum and sum-of-squares.
        s1 = jnp.sum(x, axis=-1, keepdims=True)
        s2 = jnp.sum(x * x, axis=-1, keepdims=True)
        mean = s1 * (1.0 / n)
        var = s2 * (1.0 / n) - mean * mean
        inv = lax.rsqrt(var + LN_EPS)
        xn = (x - mean) * inv * ln_w_ref[...] + ln_b_ref[...]
        xn_ref[...] = xn.astype(mxu_dtype)
        # Fold the second-linear bias into the accumulator init.
        acc_ref[...] = jnp.broadcast_to(b2_ref[...], acc_ref.shape)

    # Linear(dim -> hidden_tile): MXU matmul, f32 accumulation.
    h = jnp.dot(xn_ref[...], w1_ref[...],
                preferred_element_type=jnp.float32) + b1_ref[...]

    # GELU.
    if approx_gelu:
        # tanh approximation -> tanh goes to the EUP slot (nearly free).
        h = 0.5 * h * (1.0 + jnp.tanh(_SQRT_2_OVER_PI * (h + 0.044715 * h * h * h)))
    else:
        # Exact erf variant (torch nn.GELU default).
        h = 0.5 * h * (1.0 + lax.erf(h * _INV_SQRT_2))

    # Linear(hidden_tile -> dim): accumulate into the f32 scratch.
    acc_ref[...] += jnp.dot(h.astype(mxu_dtype), w2_ref[...],
                            preferred_element_type=jnp.float32)

    @pl.when(k == pl.num_programs(1) - 1)
    def _finalize():
        o_ref[...] = acc_ref[...].astype(o_ref.dtype)


def feedforward(x, ln_w, ln_b, w1, b1, w2, b2, *,
                row_tile=256, hidden_tile=None,
                approx_gelu=True, mxu_dtype=jnp.bfloat16,
                vmem_limit_bytes=64 * 1024 * 1024):
    """x: [batch, seq, dim] -> [batch, seq, dim].

    Equivalent to nn.Sequential(LayerNorm(dim), Linear(dim, hidden), GELU(),
    Dropout(0), Linear(hidden, dim), Dropout(0)).
    For best lane utilization, dim / hidden should be multiples of 128 in
    production; other sizes still compile (blocks span the full extent when
    the hidden axis is not tiled).
    """
    b, s, dim = x.shape
    hidden = w1.shape[1]
    tokens = b * s

    # Effective row tile: clamp to the 8-aligned token count so small inputs
    # don't over-pad, then pad the token axis to a multiple of the tile
    # (padded rows are computed and discarded -- no divisibility assert).
    rt = min(row_tile, max(8, ((tokens + 7) // 8) * 8))
    rt = ((rt + 7) // 8) * 8
    padded_tokens = ((tokens + rt - 1) // rt) * rt

    x2d = x.reshape(tokens, dim)
    if padded_tokens != tokens:
        x2d = jnp.pad(x2d, ((0, padded_tokens - tokens), (0, 0)))

    # Hidden-dim tiling (reduction axis).  Tile must be a multiple of 128 and
    # divide hidden; otherwise keep the full hidden extent resident.
    if hidden_tile is None:
        hidden_tile = min(hidden, 512)
    if hidden % hidden_tile != 0 or (hidden_tile != hidden and hidden_tile % 128 != 0):
        hidden_tile = hidden
    kt = hidden // hidden_tile

    # bf16 (or requested MXU dtype) weights: halves weight DMA bytes & VMEM.
    w1c = w1.astype(mxu_dtype)
    w2c = w2.astype(mxu_dtype)
    ln_w2 = ln_w.reshape(1, dim).astype(jnp.float32)
    ln_b2 = ln_b.reshape(1, dim).astype(jnp.float32)
    b1_2 = b1.reshape(1, hidden).astype(jnp.float32)
    b2_2 = b2.reshape(1, dim).astype(jnp.float32)

    grid = (padded_tokens // rt, kt)
    kernel = partial(_ffn_kernel, approx_gelu=approx_gelu, mxu_dtype=mxu_dtype)

    out = pl.pallas_call(
        kernel,
        out_shape=jax.ShapeDtypeStruct((padded_tokens, dim), x.dtype),
        grid_spec=pltpu.PrefetchScalarGridSpec(
            num_scalar_prefetch=0,
            grid=grid,
            in_specs=[
                pl.BlockSpec((rt, dim), lambda i, k: (i, 0)),            # x rows (resident across k)
                pl.BlockSpec((1, dim), lambda i, k: (0, 0)),             # ln weight
                pl.BlockSpec((1, dim), lambda i, k: (0, 0)),             # ln bias
                pl.BlockSpec((dim, hidden_tile), lambda i, k: (0, k)),   # w1 slab
                pl.BlockSpec((1, hidden_tile), lambda i, k: (0, k)),     # b1 slab
                pl.BlockSpec((hidden_tile, dim), lambda i, k: (k, 0)),   # w2 slab
                pl.BlockSpec((1, dim), lambda i, k: (0, 0)),             # b2
            ],
            out_specs=pl.BlockSpec((rt, dim), lambda i, k: (i, 0)),
            scratch_shapes=[
                pltpu.VMEM((rt, dim), mxu_dtype),     # cached LayerNorm output
                pltpu.VMEM((rt, dim), jnp.float32),   # f32 output accumulator
            ],
        ),
        compiler_params=pltpu.CompilerParams(
            dimension_semantics=("parallel", "arbitrary"),
            vmem_limit_bytes=vmem_limit_bytes,
        ),
    )(x2d, ln_w2, ln_b2, w1c, b1_2, w2c, b2_2)

    return out[:tokens].reshape(b, s, dim)


if __name__ == "__main__":
    batch, seq, dim, hidden_dim = 2, 8, 128, 256

    key = jax.random.PRNGKey(0)
    kx, kw1, kb1, kw2, kb2 = jax.random.split(key, 5)

    x = jax.random.normal(kx, (batch, seq, dim), dtype=jnp.float32)

    # Deterministic parameter init (Kaiming-uniform-ish like nn.Linear defaults).
    lim1 = 1.0 / math.sqrt(dim)
    lim2 = 1.0 / math.sqrt(hidden_dim)
    ln_w = jnp.ones((dim,), jnp.float32)
    ln_b = jnp.zeros((dim,), jnp.float32)
    w1 = jax.random.uniform(kw1, (dim, hidden_dim), jnp.float32, -lim1, lim1)
    b1 = jax.random.uniform(kb1, (hidden_dim,), jnp.float32, -lim1, lim1)
    w2 = jax.random.uniform(kw2, (hidden_dim, dim), jnp.float32, -lim2, lim2)
    b2 = jax.random.uniform(kb2, (dim,), jnp.float32, -lim2, lim2)

    # Pure-JAX reference: exact module semantics (f32 matmuls, exact-erf GELU).
    def ref(x):
        mu = jnp.mean(x, -1, keepdims=True)
        var = jnp.mean((x - mu) ** 2, -1, keepdims=True)
        xn = (x - mu) / jnp.sqrt(var + LN_EPS) * ln_w + ln_b
        h = xn @ w1 + b1
        h = 0.5 * h * (1.0 + lax.erf(h / math.sqrt(2.0)))
        return h @ w2 + b2

    y_ref = ref(x)

    # Exact path (f32 MXU operands, erf GELU, hidden tiled) -- tight tolerance.
    y_exact = feedforward(x, ln_w, ln_b, w1, b1, w2, b2,
                          hidden_tile=128, approx_gelu=False,
                          mxu_dtype=jnp.float32)
    jax.block_until_ready(y_exact)
    assert jnp.allclose(y_exact, y_ref, atol=1e-4, rtol=1e-4)

    # Fast path (bf16 MXU operands, tanh GELU) -- looser tolerance.
    y_fast = feedforward(x, ln_w, ln_b, w1, b1, w2, b2, hidden_tile=128)
    jax.block_until_ready(y_fast)
    assert jnp.allclose(y_fast, y_ref, atol=5e-2, rtol=5e-2)

    print("KERNEL_OK")
</pallas_src>

<mosaic_0001>
module attributes {stable_mosaic.version = 11 : i64} {
  func.func @_ffn_kernel(%arg0: i32, %arg1: i32, %arg2: memref<16x128xf32, #tpu.memory_space<vmem>>, %arg3: memref<1x128xf32, #tpu.memory_space<vmem>>, %arg4: memref<1x128xf32, #tpu.memory_space<vmem>>, %arg5: memref<128x128xf32, #tpu.memory_space<vmem>>, %arg6: memref<1x128xf32, #tpu.memory_space<vmem>>, %arg7: memref<128x128xf32, #tpu.memory_space<vmem>>, %arg8: memref<1x128xf32, #tpu.memory_space<vmem>>, %arg9: memref<16x128xf32, #tpu.memory_space<vmem>>, %arg10: memref<16x128xf32, #tpu.memory_space<vmem>>, %arg11: memref<16x128xf32, #tpu.memory_space<vmem>>) attributes {dimension_semantics = [#tpu.dimension_semantics<parallel>, #tpu.dimension_semantics<arbitrary>], iteration_bounds = array<i64: 1, 2>, scalar_prefetch = 0 : i64, scratch_operands = 2 : i64, tpu.core_type = #tpu.core_type<tc>, window_params = [{transform_indices = @transform_0, window_bounds = array<i64: 16, 128>}, {pipeline_mode = #tpu.pipeline_mode<synchronous>, transform_indices = @transform_1, window_bounds = array<i64: 1, 128>}, {pipeline_mode = #tpu.pipeline_mode<synchronous>, transform_indices = @transform_2, window_bounds = array<i64: 1, 128>}, {transform_indices = @transform_3, window_bounds = array<i64: 128, 128>}, {transform_indices = @transform_4, window_bounds = array<i64: 1, 128>}, {transform_indices = @transform_5, window_bounds = array<i64: 128, 128>}, {pipeline_mode = #tpu.pipeline_mode<synchronous>, transform_indices = @transform_6, window_bounds = array<i64: 1, 128>}, {transform_indices = @transform_7, window_bounds = array<i64: 16, 128>}]} {
    %c0_i32 = arith.constant 0 : i32
    %0 = arith.cmpi eq, %arg1, %c0_i32 : i32
    %1 = arith.extui %0 : i1 to i32
    %c0_i32_0 = arith.constant 0 : i32
    %2 = arith.cmpi ne, %1, %c0_i32_0 : i32
    scf.if %2 {
      %c0_17 = arith.constant 0 : index
      %c0_18 = arith.constant 0 : index
      %25 = vector.load %arg2[%c0_17, %c0_18] : memref<16x128xf32, #tpu.memory_space<vmem>>, vector<16x128xf32>
      %cst_19 = arith.constant dense<0.000000e+00> : vector<16xf32>
      %26 = vector.multi_reduction <add>, %25, %cst_19 [1] : vector<16x128xf32> to vector<16xf32>
      %27 = vector.shape_cast %26 : vector<16xf32> to vector<16x1xf32>
      %28 = arith.mulf %25, %25 : vector<16x128xf32>
      %cst_20 = arith.constant dense<0.000000e+00> : vector<16xf32>
      %29 = vector.multi_reduction <add>, %28, %cst_20 [1] : vector<16x128xf32> to vector<16xf32>
      %30 = vector.shape_cast %29 : vector<16xf32> to vector<16x1xf32>
      %cst_21 = arith.constant 7.812500e-03 : f32
      %31 = vector.broadcast %cst_21 : f32 to vector<16x1xf32>
      %32 = arith.mulf %27, %31 : vector<16x1xf32>
      %cst_22 = arith.constant 7.812500e-03 : f32
      %33 = vector.broadcast %cst_22 : f32 to vector<16x1xf32>
      %34 = arith.mulf %30, %33 : vector<16x1xf32>
      %35 = arith.mulf %32, %32 : vector<16x1xf32>
      %36 = arith.subf %34, %35 : vector<16x1xf32>
      %cst_23 = arith.constant 9.99999974E-6 : f32
      %37 = vector.broadcast %cst_23 : f32 to vector<16x1xf32>
      %38 = arith.addf %36, %37 : vector<16x1xf32>
      %39 = math.rsqrt %38 : vector<16x1xf32>
      %40 = vector.broadcast %32 : vector<16x1xf32> to vector<16x128xf32>
      %41 = arith.subf %25, %40 : vector<16x128xf32>
      %42 = vector.broadcast %39 : vector<16x1xf32> to vector<16x128xf32>
      %43 = arith.mulf %41, %42 : vector<16x128xf32>
      %c0_24 = arith.constant 0 : index
      %c0_25 = arith.constant 0 : index
      %44 = vector.load %arg3[%c0_24, %c0_25] : memref<1x128xf32, #tpu.memory_space<vmem>>, vector<1x128xf32>
      %45 = vector.broadcast %44 : vector<1x128xf32> to vector<16x128xf32>
      %46 = arith.mulf %43, %45 : vector<16x128xf32>
      %c0_26 = arith.constant 0 : index
      %c0_27 = arith.constant 0 : index
      %47 = vector.load %arg4[%c0_26, %c0_27] : memref<1x128xf32, #tpu.memory_space<vmem>>, vector<1x128xf32>
      %48 = vector.broadcast %47 : vector<1x128xf32> to vector<16x128xf32>
      %49 = arith.addf %46, %48 : vector<16x128xf32>
      %c0_28 = arith.constant 0 : index
      %c0_29 = arith.constant 0 : index
      %50 = vector.load %arg10[%c0_28, %c0_29] : memref<16x128xf32, #tpu.memory_space<vmem>>, vector<16x128xf32>
      tpu.vector_store %arg10[%c0_28, %c0_29], %49 {strides = array<i32>} : memref<16x128xf32, #tpu.memory_space<vmem>>, vector<16x128xf32>,
      %c0_30 = arith.constant 0 : index
      %c0_31 = arith.constant 0 : index
      %51 = vector.load %arg8[%c0_30, %c0_31] : memref<1x128xf32, #tpu.memory_space<vmem>>, vector<1x128xf32>
      %52 = vector.shape_cast %51 : vector<1x128xf32> to vector<1x128xf32>
      %53 = vector.broadcast %52 : vector<1x128xf32> to vector<16x128xf32>
      %c0_32 = arith.constant 0 : index
      %c0_33 = arith.constant 0 : index
      %54 = vector.load %arg11[%c0_32, %c0_33] : memref<16x128xf32, #tpu.memory_space<vmem>>, vector<16x128xf32>
      tpu.vector_store %arg11[%c0_32, %c0_33], %53 {strides = array<i32>} : memref<16x128xf32, #tpu.memory_space<vmem>>, vector<16x128xf32>,
    } else {
    }
    %c0 = arith.constant 0 : index
    %c0_1 = arith.constant 0 : index
    %3 = vector.load %arg10[%c0, %c0_1] : memref<16x128xf32, #tpu.memory_space<vmem>>, vector<16x128xf32>
    %c0_2 = arith.constant 0 : index
    %c0_3 = arith.constant 0 : index
    %4 = vector.load %arg5[%c0_2, %c0_3] : memref<128x128xf32, #tpu.memory_space<vmem>>, vector<128x128xf32>
    %cst = arith.constant dense<0.000000e+00> : vector<16x128xf32>
    %5 = tpu.matmul %3, %4, %cst {dimension_numbers = #tpu.dot_dimension_numbers<[1], [0], [0], [1], [0, 0, 1, 1], [], []>} : vector<16x128xf32>, vector<128x128xf32>, vector<16x128xf32> -> vector<16x128xf32>
    %c0_4 = arith.constant 0 : index
    %c0_5 = arith.constant 0 : index
    %6 = vector.load %arg6[%c0_4, %c0_5] : memref<1x128xf32, #tpu.memory_space<vmem>>, vector<1x128xf32>
    %7 = vector.broadcast %6 : vector<1x128xf32> to vector<16x128xf32>
    %8 = arith.addf %5, %7 : vector<16x128xf32>
    %cst_6 = arith.constant 5.000000e-01 : f32
    %9 = vector.broadcast %cst_6 : f32 to vector<16x128xf32>
    %10 = arith.mulf %9, %8 : vector<16x128xf32>
    %cst_7 = arith.constant 0.707106769 : f32
    %11 = vector.broadcast %cst_7 : f32 to vector<16x128xf32>
    %12 = arith.mulf %8, %11 : vector<16x128xf32>
    %13 = math.erf %12 : vector<16x128xf32>
    %cst_8 = arith.constant 1.000000e+00 : f32
    %14 = vector.broadcast %cst_8 : f32 to vector<16x128xf32>
    %15 = arith.addf %14, %13 : vector<16x128xf32>
    %16 = arith.mulf %10, %15 : vector<16x128xf32>
    %c0_9 = arith.constant 0 : index
    %c0_10 = arith.constant 0 : index
    %17 = vector.load %arg11[%c0_9, %c0_10] : memref<16x128xf32, #tpu.memory_space<vmem>>, vector<16x128xf32>
    %c0_11 = arith.constant 0 : index
    %c0_12 = arith.constant 0 : index
    %18 = vector.load %arg7[%c0_11, %c0_12] : memref<128x128xf32, #tpu.memory_space<vmem>>, vector<128x128xf32>
    %cst_13 = arith.constant dense<0.000000e+00> : vector<16x128xf32>
    %19 = tpu.matmul %16, %18, %cst_13 {dimension_numbers = #tpu.dot_dimension_numbers<[1], [0], [0], [1], [0, 0, 1, 1], [], []>} : vector<16x128xf32>, vector<128x128xf32>, vector<16x128xf32> -> vector<16x128xf32>
    %20 = arith.addf %17, %19 : vector<16x128xf32>
    %c0_14 = arith.constant 0 : index
    %c0_15 = arith.constant 0 : index
    %21 = vector.load %arg11[%c0_14, %c0_15] : memref<16x128xf32, #tpu.memory_space<vmem>>, vector<16x128xf32>
    tpu.vector_store %arg11[%c0_14, %c0_15], %20 {strides = array<i32>} : memref<16x128xf32, #tpu.memory_space<vmem>>, vector<16x128xf32>,
    %c1_i32 = arith.constant 1 : i32
    %22 = arith.cmpi eq, %arg1, %c1_i32 : i32
    %23 = arith.extui %22 : i1 to i32
    %c0_i32_16 = arith.constant 0 : i32
    %24 = arith.cmpi ne, %23, %c0_i32_16 : i32
    scf.if %24 {
      %c0_17 = arith.constant 0 : index
      %c0_18 = arith.constant 0 : index
      %25 = vector.load %arg11[%c0_17, %c0_18] : memref<16x128xf32, #tpu.memory_space<vmem>>, vector<16x128xf32>
      %c0_19 = arith.constant 0 : index
      %c0_20 = arith.constant 0 : index
      %26 = vector.load %arg9[%c0_19, %c0_20] : memref<16x128xf32, #tpu.memory_space<vmem>>, vector<16x128xf32>
      tpu.vector_store %arg9[%c0_19, %c0_20], %25 {strides = array<i32>} : memref<16x128xf32, #tpu.memory_space<vmem>>, vector<16x128xf32>,
    } else {
    }
    return
  }
  func.func @transform_0(%arg0: i32, %arg1: i32) -> (i32, i32) {
    %c0_i32 = arith.constant 0 : i32
    %c0_i32_0 = arith.constant 0 : i32
    return %arg0, %c0_i32 : i32, i32
  }
  func.func @transform_1(%arg0: i32, %arg1: i32) -> (i32, i32) {
    %c0_i32 = arith.constant 0 : i32
    %c0_i32_0 = arith.constant 0 : i32
    %c0_i32_1 = arith.constant 0 : i32
    return %c0_i32, %c0_i32_0 : i32, i32
  }
  func.func @transform_2(%arg0: i32, %arg1: i32) -> (i32, i32) {
    %c0_i32 = arith.constant 0 : i32
    %c0_i32_0 = arith.constant 0 : i32
    %c0_i32_1 = arith.constant 0 : i32
    return %c0_i32, %c0_i32_0 : i32, i32
  }
  func.func @transform_3(%arg0: i32, %arg1: i32) -> (i32, i32) {
    %c0_i32 = arith.constant 0 : i32
    %c0_i32_0 = arith.constant 0 : i32
    return %c0_i32, %arg1 : i32, i32
  }
  func.func @transform_4(%arg0: i32, %arg1: i32) -> (i32, i32) {
    %c0_i32 = arith.constant 0 : i32
    %c0_i32_0 = arith.constant 0 : i32
    return %c0_i32, %arg1 : i32, i32
  }
  func.func @transform_5(%arg0: i32, %arg1: i32) -> (i32, i32) {
    %c0_i32 = arith.constant 0 : i32
    %c0_i32_0 = arith.constant 0 : i32
    return %arg1, %c0_i32 : i32, i32
  }
  func.func @transform_6(%arg0: i32, %arg1: i32) -> (i32, i32) {
    %c0_i32 = arith.constant 0 : i32
    %c0_i32_0 = arith.constant 0 : i32
    %c0_i32_1 = arith.constant 0 : i32
    return %c0_i32, %c0_i32_0 : i32, i32
  }
  func.func @transform_7(%arg0: i32, %arg1: i32) -> (i32, i32) {
    %c0_i32 = arith.constant 0 : i32
    %c0_i32_0 = arith.constant 0 : i32
    return %arg0, %c0_i32 : i32, i32
  }
}

</mosaic_0001>

<bundles_post_ra>
// kernel: tpu_custom_call.1
= control target key start
LH: loop header
LB: loop body
LE: loop exit
PB: predicated region body
PF: predicated region fallthrough
CT: control target
= control target key end

     0   :  { %s1500_s0 = inlined_call_operand.hbm [shape: f32[16,128], index: 0, kind: input, shape index: {}]   ;;  %s1501_s1 = inlined_call_operand.vmem [shape: f32[1,128], index: 1, kind: input, shape index: {}]   ;;  %s1502_s2 = inlined_call_operand.hbm [shape: f32[1,128], index: 2, kind: input, shape index: {}]   ;;  %s1503_s3 = inlined_call_operand.hbm [shape: f32[128,256], index: 3, kind: input, shape index: {}]   ;;  %s1504_s4 = inlined_call_operand.vmem [shape: f32[1,256], index: 4, kind: input, shape index: {}]   ;;  %s1505_s5 = inlined_call_operand.hbm [shape: f32[256,128], index: 5, kind: input, shape index: {}]   ;;  %s1506_s6 = inlined_call_operand.vmem [shape: f32[1,128], index: 6, kind: input, shape index: {}]   ;;  %s1507_s7 = inlined_call_operand.hbm [shape: f32[16,128], index: 7, kind: output, shape index: {}]  }
   0x1   :  { %1514 = sst [smem:[#allocation17_spill]] %s1500_s0 }
   0x2   :  { %1515 = sst [smem:[#allocation18_spill]] %s1503_s3 }
   0x3   :  { %1516 = sst [smem:[#allocation19_spill]] %s1507_s7 }
   0x4   :  { %12 = vsyncpa [#allocation5], 0 }
   0x5   :  { %13 = vsyncpa [#allocation8], 0 }
   0x6   :  { %14 = vsyncpa [#allocation6], 0  ;;  %s1266_s24 = smov 0   ;;  %s1268_s25 = smov 0  }
   0x7   :  { %s1270_s26 = smov 0   ;;  %s1272_s27 = smov 0  }
   0x8   :  { %s1274_s28 = smov 0   ;;  %s1276_s29 = smov 0  }
   0x9 LB: > { %s1295_s30 = sadd.s32 4294967295, %s1214_s29   ;;  %p114_p0 = scmp.ne.s32.totalorder %s1202_s26, %s1198_s25  ;;  %s1214_s29 = sphi %s1276_s29, %s20_s29   ;;  %s1210_s28 = sphi %s1274_s28, %s1537_s28   ;;  %s1206_s27 = sphi %s1272_s27, %s1536_s27   ;;  %s1202_s26 = sphi %s1270_s26, %s1535_s26   ;;  %s1198_s25 = sphi %s1268_s25, %s1534_s25   ;;  %s1194_s24 = sphi %s1266_s24, %s1533_s24  }
   0xa   : > { %p115_p1 = scmp.eq.s32.totalorder %s1214_s29, 0  ;;  %p120_p2 = scmp.ne.s32.totalorder %s1198_s25, %s1194_s24 }
   0xb   : > { %p1508_p3 = scmp.eq.s32.totalorder %s1295_s30, 0  ;;  %p788_p5 = scmp.ge.s32.totalorder %s1214_s29, 1 }
   0xc   : > { %p116_p4 = por %p115_p1, %p114_p0  ;;  %p230_p7 = scmp.lt.s32.totalorder %s1214_s29, 3 }
   0xd   : > { %p1306_p6 = por %p1508_p3, %p120_p2  ;;  %s1216_s11 = smov [#allocation4]  }
   0xe   : > { %p1311_p8 = pnand %p788_p5, %p230_p7  ;;  %s245_s12 = sshll.u32 %s1216_s11, 4  ;;  %s246_s12 = int_to_ptr.vmem [resolvable:$true] %s245_s12 }
   0xf   : > { %p951_p10 = scmp.lt.s32.totalorder %s1214_s29, 2  ;;  %s29_s15 = sadd.s32 1, %s1210_s28 }
  0x10   : > { %p935_p9 = pneg %p1311_p8  ;;  %s1031_s16 = scalar_lea.vmem %s246_s12, 256 }
  0x11   : > { %p1324_p12 = pnand %p951_p10, %p116_p4  ;;  %p1032_p0 = scmp.ne.s32.totalorder %s246_s12, %s1031_s16 }
  0x12   : > { %p1320_p11 = pnand %p935_p9, %p1508_p3  ;;  %p1039_p5 = scmp.lt.s32.totalorder %s246_s12, %s246_s12 }
  0x13   : > { %p1040_p7 = scmp.lt.s32.totalorder %s1031_s16, %s1031_s16 }
  0x14   : > { %p1022_p13 = pneg %p1320_p11 }
  0x15   : > { %p1041_p9 = por %p1040_p7, %p1039_p5 }
  0x16   : > { %p1034_p1 = pnand %p1032_p0, %p1022_p13 }
  0x18   : > { %p1035_p2 = pneg %p1034_p1 }
  0x1a   : > { %p1042_p3 = pnand %p1041_p9, %p1035_p2 }
  0x1c   : > { %1045 = shalt.err (!%p1042_p3)
}
  0x1d   : > { %s1509_s17 = smov 128   ;;  %s1511_s18 = smov 8  }
  0x1e   : > { %s1521_s0 = sld [smem:[#allocation17_spill]]  ;;  %p30_p4 = scmp.ge.s32.totalorder %s29_s15, 2 }
  0x1f   : > { %s276_s21 = sand.u32 1, %s1214_s29   ;;  %s278_s22 = sand.u32 1, %s1202_s26  }
  0x20   : > { %s1539_s15 = smov (%p30_p4, %s29_s15), 0  ;;  %s1346_s23 = sshll.u32 %s278_s22, 7 }
  0x21   : > { %1522 = sst [smem:[#allocation16_spill]] %s1539_s15  ;;  %s104_s24 = ssub.s32 %s1210_s28, %s1539_s15 }
  0x22   : > { %p105_p3 = scmp.eq.s32.totalorder %s104_s24, 0  ;;  %s793_s11 = sshll.u32 %s1210_s28, 7 }
  0x23   : > { %s1523_s3 = sld [smem:[#allocation18_spill]]  ;;  %s280_s19 = scalar_lea.vmem [#allocation9], %s1346_s23 }
  0x24   : > { %938 = dma.hbm_to_vmem [thread:$0]  (!%p1320_p11), %s1521_s0, 256, %s246_s12, [#allocation5], %s1509_s17, %s1509_s17, %s1511_s18  }
  0x25   : > { %s286_s20 = sshll.u32 %s280_s19, 4  ;;  %s1524_s12 = sadd.s32 1, %s1202_s26  ;;  %s287_s20 = int_to_ptr.vmem [resolvable:$true] %s286_s20 }
  0x26   : > { %s1358_s17 = scalar_select %p105_p3, %s1202_s26, %s1524_s12  }
  0x27   : > { %s1360_s18 = scalar_lea.sflag [#allocation5], %s276_s21  ;;  %p1048_p10 = pneg %p1324_p12 }
  0x28   : > { %s1059_s22 = scalar_lea.vmem %s287_s20, 2048  ;;  %s1219_s24 = smov [#allocation9]  }
  0x29   : > { %s285_s7 = scalar_lea.hbm %s1523_s3, %s793_s11  ;;  %p1060_p0 = scmp.ne.s32.totalorder %s287_s20, %s1059_s22 }
  0x2a   : > { %s1064_s0 = sshll.u32 %s1219_s24, 4  ;;  %s1065_s0 = int_to_ptr.vmem [resolvable:$false] %s1064_s0 }
  0x2b   : > { %p1062_p1 = pnand %p1060_p0, %p1048_p10  ;;  %s1066_s8 = scalar_lea.vmem %s1065_s0, 4096 }
  0x2c   : > { %p1067_p5 = scmp.lt.s32.totalorder %s287_s20, %s1065_s0  ;;  %p1068_p7 = scmp.lt.s32.totalorder %s1066_s8, %s1059_s22 }
  0x2d   : > { %p1063_p2 = pneg %p1062_p1 }
  0x2e   : > { %p1069_p9 = por %p1068_p7, %p1067_p5 }
  0x30   : > { %p1070_p4 = pnand %p1069_p9, %p1063_p2 }
  0x32   : > { %1073 = shalt.err (!%p1070_p4)
}
  0x33   : > { %s1220_s11 = smov 256   ;;  %s1525_s21 = smov 8  }
  0x34   : > { %s1526_s16 = smov 128   ;;  %s1221_s19 = smov [#allocation7]  }
  0x35   : > { %945 = dma.hbm_to_vmem [thread:$0]  (!%p1324_p12), %s285_s7, 2048, %s287_s20, %s1360_s18, %s1220_s11, %s1526_s16, %s1525_s21  }
  0x36   : > { %s262_s12 = sshll.u32 %s1221_s19, 4  ;;  %s812_s3 = sshll.u32 %s1210_s28, 11  ;;  %s263_s12 = int_to_ptr.vmem [resolvable:$true] %s262_s12 }
  0x37   : > { %s1376_s0 = scalar_lea.hbm %s1505_s5, %s812_s3  ;;  %s1085_s22 = scalar_lea.vmem %s263_s12, 16 }
  0x38   : > { %p1086_p3 = scmp.ne.s32.totalorder %s263_s12, %s1085_s22  ;;  %s1092_s8 = scalar_lea.vmem %s263_s12, 32 }
  0x39   : > { %p1093_p2 = scmp.lt.s32.totalorder %s263_s12, %s263_s12  ;;  %p1094_p5 = scmp.lt.s32.totalorder %s1092_s8, %s1085_s22 }
  0x3a   : > { %p1088_p0 = pnand %p1086_p3, %p1022_p13 }
  0x3b   : > { %p1095_p7 = por %p1094_p5, %p1093_p2 }
  0x3c   : > { %p1089_p1 = pneg %p1088_p0 }
  0x3e   : > { %p1096_p9 = pnand %p1095_p7, %p1089_p1 }
  0x40   : > { %1099 = shalt.err (!%p1096_p9)
}
  0x41   : > { %941 = dma.hbm_to_vmem [thread:$0]  (!%p1320_p11), %s1502_s2, 16, %s263_s12, [#allocation8]  }
  0x42   : > { %s306_s3 = scalar_lea.vmem [#allocation10], %s1346_s23  ;;  %s1222_s19 = smov [#allocation10]  }
  0x43   : > { %s313_s15 = sshll.u32 %s306_s3, 4  ;;  %s1118_s24 = sshll.u32 %s1222_s19, 4  ;;  %s314_s15 = int_to_ptr.vmem [resolvable:$true] %s313_s15  ;;  %s1119_s24 = int_to_ptr.vmem [resolvable:$false] %s1118_s24 }
  0x44   : > { %s1113_s11 = scalar_lea.vmem %s314_s15, 2048  ;;  %s1120_s22 = scalar_lea.vmem %s1119_s24, 4096 }
  0x45   : > { %p1114_p13 = scmp.ne.s32.totalorder %s314_s15, %s1113_s11  ;;  %p1121_p0 = scmp.lt.s32.totalorder %s314_s15, %s1119_s24 }
  0x46   : > { %p1122_p1 = scmp.lt.s32.totalorder %s1120_s22, %s1113_s11 }
  0x47   : > { %p1116_p4 = pnand %p1114_p13, %p1048_p10 }
  0x48   : > { %p1123_p2 = por %p1122_p1, %p1121_p0 }
  0x49   : > { %p1117_p3 = pneg %p1116_p4 }
  0x4b   : > { %p1124_p5 = pnand %p1123_p2, %p1117_p3 }
  0x4d   : > { %1127 = shalt.err (!%p1124_p5)
}
  0x4e   : > { %948 = dma.hbm_to_vmem [thread:$0]  (!%p1324_p12), %s1376_s0, 2048, %s314_s15, %s1360_s18, %s1526_s16, %s1526_s16, %s1525_s21  }
  0x4f   : > { %325 = sbr.rel (%p1311_p8) target bundleno = 752 (0x2f0), region = 48  ;;  %p1527_p11 = scmp.eq.s32.totalorder (!%p1311_p8), %s1295_s30, 0 }
  0x54   : > { %1177 = dma.done.wait (%p1527_p11), [#allocation5], 256   ;;  %p1528_p10 = pmov %p1527_p11 }
  0x56   : > { %1179 = vsyncadd (%p1528_p10), [#allocation5], 4294967040  ;;  %p1529_p7 = pmov %p1528_p10 }
  0x58   : > { %1181 = dma.done.wait (%p1529_p7), [#allocation8], 16   ;;  %p1530_p9 = pmov %p1529_p7 }
  0x59   : > { %s335_s13 = sand.u32 1, %s1295_s30   ;;  %s337_s14 = sand.u32 1, %s1198_s25  }
  0x5a   : > { %1183 = vsyncadd (%p1530_p9), [#allocation8], 4294967280  ;;  %s800_s18 = sshll.u32 %s337_s14, 7  ;;  %s336_s10 = scalar_lea.sflag [#allocation5], %s335_s13 }
  0x5b   : > { %s1409_s23 = scalar_lea.vmem [#allocation9], %s800_s18 }
  0x5c   : > { %1185 = dma.done.wait (%p1306_p6), %s336_s10, 4096  }
  0x5d   : > { %1187 = vsyncadd (%p1306_p6), %s336_s10, 4294963200  ;;  %p383_p8 = scmp.lt.s32.totalorder %s1206_s27, 1  ;;  %s1423_s8 = scalar_lea.vmem [#allocation10], %s800_s18 }
  0x5e   : > { %p802_p12 = scmp.ne.s32.totalorder %s1206_s27, 0 }
  0x5f   : > { %s1417_s21 = scalar_select %p383_p8, %s1206_s27, 1 }
  0x60   : > { %391 = sbr.rel (%p802_p12) target bundleno = 273 (0x111), region = 68 }
  0x61   : > { %s385_s0 = scalar_lea.vmem %s1504_s4, %s1417_s21 }
  0x65   : > { %v392_v0 = vld [vmem:[#allocation4] sm:$0xff]  ;;  %v393_v1 = vld [vmem:[#allocation4 + $0x8] sm:$0xff]  ;;  %v804_v23 = vld [vmem:[#allocation7] ss:$0 sm:$0xff] }
  0x66   : > { %394 = vadd.xlane.f32.xlu0 %v392_v0  ;;  %v398_v2 = vmul.f32 %v392_v0, %v392_v0  ;;  %v399_v3 = vmul.f32 %v393_v1, %v393_v1  ;;  %v805_v4 = vld [vmem:[%s1506_s6] ss:$0 sm:$0xff] }
  0x67   : > { %447 = vst [vmem:[#allocation3 + $0x8] sm:$0xff] %v805_v4  ;;  %448 = vst [vmem:[#allocation3] sm:$0xff] %v805_v4  ;;  %v803_v21 = vld [vmem:[%s1501_s1] ss:$0 sm:$0xff] }
  0x68   : > { %400 = vadd.xlane.f32.xlu1 %v398_v2 }
  0x6a   : > { %396 = vadd.xlane.f32.xlu0 %v393_v1 }
  0x6c   : > { %402 = vadd.xlane.f32.xlu1 %v399_v3 }
  0xef   : > { %v395_v5 = vpop.xlane.xlu0 %394 }
  0xf0   : > { %v404_v6 = vmul.f32 0.0078125, %v395_v5 }
  0xf1   : > { %v401_v7 = vpop.xlane.xlu1 %400 }
  0xf2   : > { %v408_v8 = vmul.f32 %v404_v6, %v404_v6  ;;  %v406_v9 = vmul.f32 0.0078125, %v401_v7  ;;  %v416_v19 = vsub.f32 %v392_v0, %v404_v6 }
  0xf3   : > { %v397_v10 = vpop.xlane.xlu0 %396 }
  0xf4   : > { %v410_v11 = vsub.f32 %v406_v9, %v408_v8  ;;  %v405_v12 = vmul.f32 0.0078125, %v397_v10 }
  0xf5   : > { %v403_v13 = vpop.xlane.xlu1 %402 }
  0xf6   : > { %v412_v14 = vadd.f32 1e-05, %v410_v11  ;;  %v409_v15 = vmul.f32 %v405_v12, %v405_v12  ;;  %v407_v16 = vmul.f32 0.0078125, %v403_v13  ;;  %v417_v25 = vsub.f32 %v393_v1, %v405_v12 }
  0xf8   : > { %1012 = vrsqrt.f32 %v412_v14  ;;  %v411_v17 = vsub.f32 %v407_v16, %v409_v15 }
  0xfa   : > { %v413_v18 = vadd.f32 1e-05, %v411_v17 }
  0xfc   : > { %1014 = vrsqrt.f32 %v413_v18 }
 0x105   : > { %v1013_v20 = vpop.eup %1012 }
 0x106   : > { %v418_v22 = vmul.f32 %v1013_v20, %v416_v19 }
 0x108   : > { %v427_v24 = vmul.f32 %v803_v21, %v418_v22 }
 0x109   : > { %v1015_v26 = vpop.eup %1014 }
 0x10a   : > { %v436_v27 = vadd.f32 %v804_v23, %v427_v24  ;;  %v419_v28 = vmul.f32 %v1015_v26, %v417_v25 }
 0x10c   : > { %438 = vst [vmem:[#allocation2] sm:$0xff] %v436_v27  ;;  %v428_v29 = vmul.f32 %v803_v21, %v419_v28 }
 0x10e   : > { %v437_v30 = vadd.f32 %v804_v23, %v428_v29 }
 0x110   : > { %439 = vst [vmem:[#allocation2 + $0x8] sm:$0xff] %v437_v30 }
 0x111 PF: > { %v466_v31 = vld [vmem:[%s1409_s23 + $0x78] sm:$0xff]  ;;  %v465_v32 = vld [vmem:[%s1409_s23 + $0x70] sm:$0xff]  ;;  %v464_v33 = vld [vmem:[%s1409_s23 + $0x68] sm:$0xff]  ;;  %p807_p6 = scmp.ne.s32.totalorder %s1206_s27, 1 }
 0x112   : > { %849 = vmatprep.subr.mxu0 %v466_v31  ;;  %v463_v34 = vld [vmem:[%s1409_s23 + $0x60] sm:$0xff]  ;;  %v462_v36 = vld [vmem:[%s1409_s23 + $0x58] sm:$0xff]  ;;  %v575_v38 = vld [vmem:[%s1423_s8 + $0x70] sm:$0xff] }
 0x113   : > { %850 = vmatpush3.msra.mxu0 %v466_v31  ;;  %v449_v35 = vld [vmem:[#allocation2] sm:$0xff]  ;;  %v576_v37 = vld [vmem:[%s1423_s8 + $0x78] sm:$0xff]  ;;  %v459_v42 = vld [vmem:[%s1409_s23 + $0x40] sm:$0xff] }
 0x114   : > { %851 = vmatprep.subr.mxu0 %v465_v32  ;;  %881 = vmatprep.mubr.f32.mxu0 %v449_v35  ;;  %v461_v39 = vld [vmem:[%s1409_s23 + $0x50] sm:$0xff]  ;;  %v574_v40 = vld [vmem:[%s1423_s8 + $0x68] sm:$0xff]  ;;  %v458_v43 = vld [vmem:[%s1409_s23 + $0x38] sm:$0xff] }
 0x115   : > { %852 = vmatpush3.msra.mxu0 %v465_v32  ;;  %884 = vmatprep.subr.mxu1 %v576_v37  ;;  %v460_v41 = vld [vmem:[%s1409_s23 + $0x48] sm:$0xff]  ;;  %v457_v44 = vld [vmem:[%s1409_s23 + $0x30] sm:$0xff]  ;;  %v455_v46 = vld [vmem:[%s1409_s23 + $0x20] sm:$0xff] }
 0x116   : > { %853 = vmatprep.subr.mxu0 %v464_v33  ;;  %885 = vmatpush3.msra.mxu1 %v576_v37  ;;  %v456_v45 = vld [vmem:[%s1409_s23 + $0x28] sm:$0xff]  ;;  %v454_v47 = vld [vmem:[%s1409_s23 + $0x18] sm:$0xff]  ;;  %v453_v48 = vld [vmem:[%s1409_s23 + $0x10] sm:$0xff] }
 0x117   : > { %854 = vmatpush3.msra.mxu0 %v464_v33  ;;  %886 = vmatprep.subr.mxu1 %v575_v38  ;;  %v452_v49 = vld [vmem:[%s1409_s23 + $0x8] sm:$0xff]  ;;  %v451_v50 = vld [vmem:[%s1409_s23] sm:$0xff]  ;;  %v450_v51 = vld [vmem:[#allocation2 + $0x8] sm:$0xff] }
 0x118   : > { %855 = vmatprep.subr.mxu0 %v463_v34  ;;  %887 = vmatpush3.msra.mxu1 %v575_v38  ;;  %v573_v52 = vld [vmem:[%s1423_s8 + $0x60] sm:$0xff]  ;;  %v572_v53 = vld [vmem:[%s1423_s8 + $0x58] sm:$0xff]  ;;  %v571_v54 = vld [vmem:[%s1423_s8 + $0x50] sm:$0xff] }
 0x119   : > { %856 = vmatpush3.msra.mxu0 %v463_v34  ;;  %888 = vmatprep.subr.mxu1 %v574_v40  ;;  %v570_v55 = vld [vmem:[%s1423_s8 + $0x48] sm:$0xff]  ;;  %v569_v56 = vld [vmem:[%s1423_s8 + $0x40] sm:$0xff]  ;;  %v568_v57 = vld [vmem:[%s1423_s8 + $0x38] sm:$0xff] }
 0x11a   : > { %857 = vmatprep.subr.mxu0 %v462_v36  ;;  %889 = vmatpush3.msra.mxu1 %v574_v40  ;;  %v567_v58 = vld [vmem:[%s1423_s8 + $0x30] sm:$0xff]  ;;  %v566_v59 = vld [vmem:[%s1423_s8 + $0x28] sm:$0xff]  ;;  %v565_v60 = vld [vmem:[%s1423_s8 + $0x20] sm:$0xff] }
 0x11b   : > { %858 = vmatpush3.msra.mxu0 %v462_v36  ;;  %890 = vmatprep.subr.mxu1 %v573_v52  ;;  %v564_v61 = vld [vmem:[%s1423_s8 + $0x18] sm:$0xff]  ;;  %v563_v62 = vld [vmem:[%s1423_s8 + $0x10] sm:$0xff]  ;;  %v562_v63 = vld [vmem:[%s1423_s8 + $0x8] sm:$0xff] }
 0x11c   : > { %859 = vmatprep.subr.mxu0 %v461_v39  ;;  %891 = vmatpush3.msra.mxu1 %v573_v52  ;;  %v561_v0 = vld [vmem:[%s1423_s8] sm:$0xff]  ;;  %v806_v1 = vld [vmem:[%s385_s0] ss:$0 sm:$0xff] }
 0x11d   : > { %860 = vmatpush3.msra.mxu0 %v461_v39  ;;  %892 = vmatprep.subr.mxu1 %v572_v53  ;;  %v560_v16 = vld [vmem:[#allocation3] sm:$0xff]  ;;  %v559_v18 = vld [vmem:[#allocation3 + $0x8] sm:$0xff] }
 0x11e   : > { %861 = vmatprep.subr.mxu0 %v460_v41  ;;  %893 = vmatpush3.msra.mxu1 %v572_v53 }
 0x11f   : > { %862 = vmatpush3.msra.mxu0 %v460_v41  ;;  %894 = vmatprep.subr.mxu1 %v571_v54 }
 0x120   : > { %863 = vmatprep.subr.mxu0 %v459_v42  ;;  %895 = vmatpush3.msra.mxu1 %v571_v54 }
 0x121   : > { %864 = vmatpush3.msra.mxu0 %v459_v42  ;;  %896 = vmatprep.subr.mxu1 %v570_v55 }
 0x122   : > { %865 = vmatprep.subr.mxu0 %v458_v43  ;;  %897 = vmatpush3.msra.mxu1 %v570_v55 }
 0x123   : > { %866 = vmatpush3.msra.mxu0 %v458_v43  ;;  %898 = vmatprep.subr.mxu1 %v569_v56 }
 0x124   : > { %867 = vmatprep.subr.mxu0 %v457_v44  ;;  %899 = vmatpush3.msra.mxu1 %v569_v56 }
 0x125   : > { %868 = vmatpush3.msra.mxu0 %v457_v44  ;;  %900 = vmatprep.subr.mxu1 %v568_v57 }
 0x126   : > { %869 = vmatprep.subr.mxu0 %v456_v45  ;;  %901 = vmatpush3.msra.mxu1 %v568_v57 }
 0x127   : > { %870 = vmatpush3.msra.mxu0 %v456_v45  ;;  %902 = vmatprep.subr.mxu1 %v567_v58 }
 0x128   : > { %871 = vmatprep.subr.mxu0 %v455_v46  ;;  %903 = vmatpush3.msra.mxu1 %v567_v58 }
 0x129   : > { %872 = vmatpush3.msra.mxu0 %v455_v46  ;;  %904 = vmatprep.subr.mxu1 %v566_v59 }
 0x12a   : > { %873 = vmatprep.subr.mxu0 %v454_v47  ;;  %905 = vmatpush3.msra.mxu1 %v566_v59 }
 0x12b   : > { %874 = vmatpush3.msra.mxu0 %v454_v47  ;;  %906 = vmatprep.subr.mxu1 %v565_v60 }
 0x12c   : > { %875 = vmatprep.subr.mxu0 %v453_v48  ;;  %907 = vmatpush3.msra.mxu1 %v565_v60 }
 0x12d   : > { %876 = vmatpush3.msra.mxu0 %v453_v48  ;;  %908 = vmatprep.subr.mxu1 %v564_v61 }
 0x12e   : > { %877 = vmatprep.subr.mxu0 %v452_v49  ;;  %909 = vmatpush3.msra.mxu1 %v564_v61 }
 0x12f   : > { %878 = vmatpush3.msra.mxu0 %v452_v49  ;;  %910 = vmatprep.subr.mxu1 %v563_v62 }
 0x130   : > { %879 = vmatprep.subr.mxu0 %v451_v50  ;;  %911 = vmatpush3.msra.mxu1 %v563_v62 }
 0x131   : > { %880 = vmatpush3.msra.mxu0 %v451_v50  ;;  %912 = vmatprep.subr.mxu1 %v562_v63 }
 0x132   : > { %882 = vmatmul.mubr.f32.vlgmr.msra.gmra.mxu0 %v450_v51  ;;  %913 = vmatpush3.msra.mxu1 %v562_v63 }
 0x133   : > { %914 = vmatprep.subr.mxu1 %v561_v0 }
 0x134   : > { %915 = vmatpush3.msra.mxu1 %v561_v0 }
 0x1f2   : > { %v883_v2 = vpop.f32.mrf.mxu0 }
 0x1f3   : > { %v546_v3 = vadd.f32 %v883_v2, %v806_v1 }
 0x1f4   : > { %v540_v4 = vpop.f32.mrf.mxu0 }
 0x1f5   : > { %v552_v5 = vmul.f32 0.70710677, %v546_v3  ;;  %v541_v6 = vadd.f32 %v806_v1, %v540_v4  ;;  %v550_v13 = vmul.f32 0.5, %v546_v3 }
 0x1f7   : > { %1016 = verf.f32 %v552_v5  ;;  %v551_v7 = vmul.f32 0.70710677, %v541_v6  ;;  %v549_v11 = vmul.f32 0.5, %v541_v6 }
 0x1f9   : > { %1018 = verf.f32 %v551_v7 }
 0x204   : > { %v1017_v8 = vpop.eup %1016 }
 0x205   : > { %v556_v10 = vadd.f32 1.0, %v1017_v8 }
 0x206   : > { %v1019_v9 = vpop.eup %1018 }
 0x207   : > { %v555_v12 = vadd.f32 1.0, %v1019_v9  ;;  %v558_v15 = vmul.f32 %v556_v10, %v550_v13 }
 0x209   : > { %v557_v14 = vmul.f32 %v555_v12, %v549_v11 }
 0x20b   : > { %916 = vmatprep.mubr.f32.mxu1 %v557_v14 }
 0x20c   : > { %917 = vmatmul.mubr.f32.vlgmr.msra.gmra.mxu1 %v558_v15 }
 0x2cc   : > { %v918_v17 = vpop.f32.mrf.mxu1 }
 0x2cd   : > { %v653_v19 = vadd.f32 %v918_v17, %v560_v16  ;;  %659 = sbr.rel (%p807_p6) target bundleno = 730 (0x2da), region = 72 }
 0x2ce   : > { %v643_v20 = vpop.f32.mrf.mxu1 }
 0x2cf   : > { %655 = vst [vmem:[#allocation3] sm:$0xff] %v653_v19  ;;  %v652_v21 = vadd.f32 %v643_v20, %v559_v18 }
 0x2d1   : > { %654 = vst [vmem:[#allocation3 + $0x8] sm:$0xff] %v652_v21 }
 0x2d6   : > { %v661_v23 = vld [vmem:[#allocation3] sm:$0xff] }
 0x2d7   : > { %663 = vst [vmem:[#allocation11 + $0x8] sm:$0xff] %v661_v23 }
 0x2d8   : > { %v660_v22 = vld [vmem:[#allocation3 + $0x8] sm:$0xff] }
 0x2d9   : > { %662 = vst [vmem:[#allocation11] sm:$0xff] %v660_v22 }
 0x2da PF: > { %p954_p13 = scmp.eq.s32.totalorder %s1295_s30, 1  ;;  %s1223_s19 = smov [#allocation11]  }
 0x2db   : > { %s673_s24 = sshll.u32 %s1223_s19, 4  ;;  %s674_s24 = int_to_ptr.vmem [resolvable:$true] %s673_s24 }
 0x2dc   : > { %s1128_s22 = scalar_lea.vmem %s674_s24, 256  ;;  %p1135_p1 = scmp.lt.s32.totalorder %s674_s24, %s674_s24 }
 0x2dd   : > { %p1129_p4 = scmp.ne.s32.totalorder %s674_s24, %s1128_s22  ;;  %p1136_p2 = scmp.lt.s32.totalorder %s1128_s22, %s1128_s22 }
 0x2df   : > { %p1130_p3 = pnand %p1129_p4, %p954_p13  ;;  %p1137_p5 = por %p1136_p2, %p1135_p1 }
 0x2e1   : > { %p1131_p0 = pneg %p1130_p3 }
 0x2e3   : > { %p1138_p11 = pnand %p1137_p5, %p1131_p0 }
 0x2e5   : > { %1141 = shalt.err (!%p1138_p11)
}
 0x2e6   : > { %s1224_s27 = smov 128   ;;  %s1225_s13 = smov 8  }
 0x2e7   : > { %s1531_s10 = sld [smem:[#allocation19_spill]] }
 0x2ed   : > { %932 = dma.vmem_to_hbm [thread:$0]  (%p954_p13), %s674_s24, 256, %s1531_s10, [#allocation6], %s1224_s27, %s1224_s27, %s1225_s13  }
 0x2ee   : > { %1189 = dma.done.wait (%p954_p13), [#allocation6], 256  }
 0x2ef   : > { %1191 = vsyncadd (%p954_p13), [#allocation6], 4294967040 }
 0x2f0 PF: > { %s20_s29 = sadd.s32 1, %s1214_s29   ;;  %s1532_s23 = sld [smem:[#allocation16_spill]] }
 0x2f1   : > { %p17_p10 = scmp.ge.s32.totalorder %s20_s29, 4   ;;  %s1533_s24 = smov %s1198_s25 }
 0x2f2   : > { %s1534_s25 = smov %s1202_s26  ;;  %s1535_s26 = smov %s1358_s17 }
 0x2f3   : > { %s1536_s27 = smov %s1210_s28  ;;  %19 = sbr.rel (!%p17_p10) target bundleno = 9 (0x9), region = 116 }
 0x2f6   : > { %s1537_s28 = smov %s1532_s23 }
 0x2f8   :  { %689 = vsyncpa [#allocation5], 1 }
 0x2f9   :  { %691 = vsyncpa [#allocation5 + $0x1], 1 }
 0x2fa   :  { %692 = vsyncpa [#allocation8], 1 }
 0x2fb   :  { %693 = vsyncpa [#allocation6], 1 }
 0x2fc   :  { %695 = vsyncpa [#allocation6 + $0x1], 1 }

</bundles_post_ra>
